<compile_context>
chip_gen: v7x
topology: tpu7x:2x2x1
jax: 0.10.0
libtpu: 0.0.40
codegen_flags: <defaults>
</compile_context>

<pallas_src>
import functools

import jax
import jax.numpy as jnp
from jax.experimental import pallas as pl
from jax.experimental.pallas import tpu as pltpu


def rnn_kernel(x_ref, h0_ref, wih_t_ref, whh_t_ref, w1_t_ref, b1_ref,
               w2_t_ref, b2_ref,
               out3_ref, hc_ref, out2_ref,
               hs_scratch, *, L, B):
    # ---- hoisted input projection: one (L*B, I) @ (I, H) matmul, off the
    # serial recurrence path ----
    gate_x = jnp.dot(x_ref[...], wih_t_ref[...],
                     preferred_element_type=jnp.float32)          # (L*B, H)

    whh_t = whh_t_ref[...]                                        # (H, H)
    h = h0_ref[0]                                                 # (B, H)

    # ---- serial tanh recurrence, fully unrolled (L is a small static int) ----
    for t in range(L):
        gx = gate_x[t * B:(t + 1) * B, :]                         # static slice
        h = jnp.tanh(gx + jnp.dot(h, whh_t,
                                  preferred_element_type=jnp.float32))
        hs_scratch[pl.ds(t * B, B), :] = h

    # Single final-hidden writeback (only the last state survives anyway).
    hc_ref[0] = h.astype(hc_ref.dtype)

    # ---- fc1 + tanh + fc on the full (L*B, 256) slab at once ----
    # TODO(synk): Dropout(p=0.2) treated as identity (eval-mode semantics).
    h_all = hs_scratch[...]                                       # (L*B, H)
    o2 = jnp.tanh(
        jnp.dot(h_all, w1_t_ref[...], preferred_element_type=jnp.float32)
        + b1_ref[...])                                            # (L*B, 64)
    o3 = (jnp.dot(o2, w2_t_ref[...], preferred_element_type=jnp.float32)
          + b2_ref[...])                                          # (L*B, 8)

    out2_ref[...] = o2.astype(out2_ref.dtype)
    out3_ref[...] = o3.astype(out3_ref.dtype)


@jax.jit
def rnn_arch_2_1_forward(x, hc, params):
    """x: (L, B, 64) f32, hc: (1, B, 256) f32
       -> (out3 (L*B, 8), hc (1, B, 256), out2 (L*B, 64))."""
    L, B, I = x.shape
    H = hc.shape[-1]

    # Pre-transpose weights (glue) so the kernel does plain row-major matmuls,
    # and flatten x to the lane-friendly (L*B, I) slab outside the kernel.
    wih_t = params["w_ih"].T                 # (64, 256)
    whh_t = params["w_hh"].T                 # (256, 256)
    w1_t = params["fc1_w"].T                 # (256, 64)
    w2_t = params["fc_w"].T                  # (64, 8)
    b1_2d = params["fc1_b"].reshape(1, 64)
    b2_2d = params["fc_b"].reshape(1, 8)
    x2d = x.reshape(L * B, I)                # (seq, batch)-major flatten

    kernel = functools.partial(rnn_kernel, L=L, B=B)

    out3, hc_out, out2 = pl.pallas_call(
        kernel,
        out_shape=(
            jax.ShapeDtypeStruct((L * B, 8), jnp.float32),
            jax.ShapeDtypeStruct((1, B, H), jnp.float32),
            jax.ShapeDtypeStruct((L * B, 64), jnp.float32),
        ),
        scratch_shapes=[pltpu.VMEM((L * B, H), jnp.float32)],
        input_output_aliases={1: 1},         # hc input buffer -> hc output
    )(x2d, hc, wih_t, whh_t, w1_t, b1_2d, w2_t, b2_2d)

    return out3, hc_out, out2


def reference_forward(x, hc, params):
    """Pure-JAX reference mirroring the PyTorch module (eval-mode dropout)."""
    L, B, _ = x.shape
    h = hc[0]
    outs = []
    for t in range(L):
        h = jnp.tanh(x[t] @ params["w_ih"].T + h @ params["w_hh"].T)
        outs.append(h)
    out = jnp.stack(outs, axis=0).reshape(L * B, 256)
    out2 = jnp.tanh(out @ params["fc1_w"].T + params["fc1_b"])
    out3 = out2 @ params["fc_w"].T + params["fc_b"]
    return out3, h[None], out2


if __name__ == "__main__":
    key = jax.random.PRNGKey(0)
    ks = jax.random.split(key, 8)

    L, B, I, H = 8, 2, 64, 256

    # Deterministic parameter init (PyTorch-like uniform +/- 1/sqrt(fan_in)).
    def u(k, shape, fan):
        bound = 1.0 / jnp.sqrt(fan)
        return jax.random.uniform(k, shape, jnp.float32, -bound, bound)

    params = {
        "w_ih": u(ks[0], (H, I), H),      # nn.RNN weight_ih_l0 (256, 64)
        "w_hh": u(ks[1], (H, H), H),      # nn.RNN weight_hh_l0 (256, 256)
        "fc1_w": u(ks[2], (64, H), H),    # nn.Linear(256, 64)
        "fc1_b": u(ks[3], (64,), H),
        "fc_w": u(ks[4], (8, 64), 64),    # nn.Linear(64, 8)
        "fc_b": u(ks[5], (8,), 64),
    }

    x = jax.random.normal(ks[6], (L, B, I), jnp.float32)
    hc = jax.random.normal(ks[7], (1, B, H), jnp.float32)

    out3, hc_out, out2 = jax.block_until_ready(
        rnn_arch_2_1_forward(x, hc, params))

    # Check against pure-JAX reference.
    r3, rh, r2 = reference_forward(x, hc, params)
    assert out3.shape == (L * B, 8)
    assert hc_out.shape == (1, B, H)
    assert out2.shape == (L * B, 64)
    assert jnp.allclose(out3, r3, atol=1e-4, rtol=1e-4)
    assert jnp.allclose(hc_out, rh, atol=1e-4, rtol=1e-4)
    assert jnp.allclose(out2, r2, atol=1e-4, rtol=1e-4)

    print("KERNEL_OK")
</pallas_src>

<mosaic_0001>
module attributes {stable_mosaic.version = 11 : i64} {
  func.func @rnn_kernel(%arg0: memref<16x64xf32, #tpu.memory_space<vmem>>, %arg1: memref<1x2x256xf32, #tpu.memory_space<vmem>>, %arg2: memref<64x256xf32, #tpu.memory_space<vmem>>, %arg3: memref<256x256xf32, #tpu.memory_space<vmem>>, %arg4: memref<256x64xf32, #tpu.memory_space<vmem>>, %arg5: memref<1x64xf32, #tpu.memory_space<vmem>>, %arg6: memref<64x8xf32, #tpu.memory_space<vmem>>, %arg7: memref<1x8xf32, #tpu.memory_space<vmem>>, %arg8: memref<16x8xf32, #tpu.memory_space<vmem>>, %arg9: memref<1x2x256xf32, #tpu.memory_space<vmem>>, %arg10: memref<16x64xf32, #tpu.memory_space<vmem>>, %arg11: memref<16x256xf32, #tpu.memory_space<vmem>>) attributes {dimension_semantics = [], scalar_prefetch = 0 : i64, scratch_operands = 1 : i64, tpu.core_type = #tpu.core_type<tc>} {
    %c0 = arith.constant 0 : index
    %c0_0 = arith.constant 0 : index
    %0 = vector.load %arg0[%c0, %c0_0] : memref<16x64xf32, #tpu.memory_space<vmem>>, vector<16x64xf32>
    %c0_1 = arith.constant 0 : index
    %c0_2 = arith.constant 0 : index
    %1 = vector.load %arg2[%c0_1, %c0_2] : memref<64x256xf32, #tpu.memory_space<vmem>>, vector<64x256xf32>
    %cst = arith.constant dense<0.000000e+00> : vector<16x256xf32>
    %2 = tpu.matmul %0, %1, %cst {dimension_numbers = #tpu.dot_dimension_numbers<[1], [0], [0], [1], [0, 0, 1, 1], [], []>} : vector<16x64xf32>, vector<64x256xf32>, vector<16x256xf32> -> vector<16x256xf32>
    %c0_3 = arith.constant 0 : index
    %c0_4 = arith.constant 0 : index
    %3 = vector.load %arg3[%c0_3, %c0_4] : memref<256x256xf32, #tpu.memory_space<vmem>>, vector<256x256xf32>
    %c0_5 = arith.constant 0 : index
    %c0_6 = arith.constant 0 : index
    %c0_7 = arith.constant 0 : index
    %4 = vector.load %arg1[%c0_5, %c0_6, %c0_7] : memref<1x2x256xf32, #tpu.memory_space<vmem>>, vector<1x2x256xf32>
    %5 = vector.shape_cast %4 : vector<1x2x256xf32> to vector<2x256xf32>
    %6 = vector.extract_strided_slice %2 {offsets = [0, 0], sizes = [2, 256], strides = [1, 1]} : vector<16x256xf32> to vector<2x256xf32>
    %cst_8 = arith.constant dense<0.000000e+00> : vector<2x256xf32>
    %7 = tpu.matmul %5, %3, %cst_8 {dimension_numbers = #tpu.dot_dimension_numbers<[1], [0], [0], [1], [0, 0, 1, 1], [], []>} : vector<2x256xf32>, vector<256x256xf32>, vector<2x256xf32> -> vector<2x256xf32>
    %8 = arith.addf %6, %7 : vector<2x256xf32>
    %9 = math.tanh %8 : vector<2x256xf32>
    %c0_9 = arith.constant 0 : index
    %c0_10 = arith.constant 0 : index
    %10 = vector.load %arg11[%c0_9, %c0_10] : memref<16x256xf32, #tpu.memory_space<vmem>>, vector<2x256xf32>
    tpu.vector_store %arg11[%c0_9, %c0_10], %9 {strides = array<i32>} : memref<16x256xf32, #tpu.memory_space<vmem>>, vector<2x256xf32>,
    %11 = vector.extract_strided_slice %2 {offsets = [2, 0], sizes = [2, 256], strides = [1, 1]} : vector<16x256xf32> to vector<2x256xf32>
    %cst_11 = arith.constant dense<0.000000e+00> : vector<2x256xf32>
    %12 = tpu.matmul %9, %3, %cst_11 {dimension_numbers = #tpu.dot_dimension_numbers<[1], [0], [0], [1], [0, 0, 1, 1], [], []>} : vector<2x256xf32>, vector<256x256xf32>, vector<2x256xf32> -> vector<2x256xf32>
    %13 = arith.addf %11, %12 : vector<2x256xf32>
    %14 = math.tanh %13 : vector<2x256xf32>
    %c2 = arith.constant 2 : index
    %c0_12 = arith.constant 0 : index
    %15 = vector.load %arg11[%c2, %c0_12] : memref<16x256xf32, #tpu.memory_space<vmem>>, vector<2x256xf32>
    tpu.vector_store %arg11[%c2, %c0_12], %14 {strides = array<i32>} : memref<16x256xf32, #tpu.memory_space<vmem>>, vector<2x256xf32>,
    %16 = vector.extract_strided_slice %2 {offsets = [4, 0], sizes = [2, 256], strides = [1, 1]} : vector<16x256xf32> to vector<2x256xf32>
    %cst_13 = arith.constant dense<0.000000e+00> : vector<2x256xf32>
    %17 = tpu.matmul %14, %3, %cst_13 {dimension_numbers = #tpu.dot_dimension_numbers<[1], [0], [0], [1], [0, 0, 1, 1], [], []>} : vector<2x256xf32>, vector<256x256xf32>, vector<2x256xf32> -> vector<2x256xf32>
    %18 = arith.addf %16, %17 : vector<2x256xf32>
    %19 = math.tanh %18 : vector<2x256xf32>
    %c4 = arith.constant 4 : index
    %c0_14 = arith.constant 0 : index
    %20 = vector.load %arg11[%c4, %c0_14] : memref<16x256xf32, #tpu.memory_space<vmem>>, vector<2x256xf32>
    tpu.vector_store %arg11[%c4, %c0_14], %19 {strides = array<i32>} : memref<16x256xf32, #tpu.memory_space<vmem>>, vector<2x256xf32>,
    %21 = vector.extract_strided_slice %2 {offsets = [6, 0], sizes = [2, 256], strides = [1, 1]} : vector<16x256xf32> to vector<2x256xf32>
    %cst_15 = arith.constant dense<0.000000e+00> : vector<2x256xf32>
    %22 = tpu.matmul %19, %3, %cst_15 {dimension_numbers = #tpu.dot_dimension_numbers<[1], [0], [0], [1], [0, 0, 1, 1], [], []>} : vector<2x256xf32>, vector<256x256xf32>, vector<2x256xf32> -> vector<2x256xf32>
    %23 = arith.addf %21, %22 : vector<2x256xf32>
    %24 = math.tanh %23 : vector<2x256xf32>
    %c6 = arith.constant 6 : index
    %c0_16 = arith.constant 0 : index
    %25 = vector.load %arg11[%c6, %c0_16] : memref<16x256xf32, #tpu.memory_space<vmem>>, vector<2x256xf32>
    tpu.vector_store %arg11[%c6, %c0_16], %24 {strides = array<i32>} : memref<16x256xf32, #tpu.memory_space<vmem>>, vector<2x256xf32>,
    %26 = vector.extract_strided_slice %2 {offsets = [8, 0], sizes = [2, 256], strides = [1, 1]} : vector<16x256xf32> to vector<2x256xf32>
    %cst_17 = arith.constant dense<0.000000e+00> : vector<2x256xf32>
    %27 = tpu.matmul %24, %3, %cst_17 {dimension_numbers = #tpu.dot_dimension_numbers<[1], [0], [0], [1], [0, 0, 1, 1], [], []>} : vector<2x256xf32>, vector<256x256xf32>, vector<2x256xf32> -> vector<2x256xf32>
    %28 = arith.addf %26, %27 : vector<2x256xf32>
    %29 = math.tanh %28 : vector<2x256xf32>
    %c8 = arith.constant 8 : index
    %c0_18 = arith.constant 0 : index
    %30 = vector.load %arg11[%c8, %c0_18] : memref<16x256xf32, #tpu.memory_space<vmem>>, vector<2x256xf32>
    tpu.vector_store %arg11[%c8, %c0_18], %29 {strides = array<i32>} : memref<16x256xf32, #tpu.memory_space<vmem>>, vector<2x256xf32>,
    %31 = vector.extract_strided_slice %2 {offsets = [10, 0], sizes = [2, 256], strides = [1, 1]} : vector<16x256xf32> to vector<2x256xf32>
    %cst_19 = arith.constant dense<0.000000e+00> : vector<2x256xf32>
    %32 = tpu.matmul %29, %3, %cst_19 {dimension_numbers = #tpu.dot_dimension_numbers<[1], [0], [0], [1], [0, 0, 1, 1], [], []>} : vector<2x256xf32>, vector<256x256xf32>, vector<2x256xf32> -> vector<2x256xf32>
    %33 = arith.addf %31, %32 : vector<2x256xf32>
    %34 = math.tanh %33 : vector<2x256xf32>
    %c10 = arith.constant 10 : index
    %c0_20 = arith.constant 0 : index
    %35 = vector.load %arg11[%c10, %c0_20] : memref<16x256xf32, #tpu.memory_space<vmem>>, vector<2x256xf32>
    tpu.vector_store %arg11[%c10, %c0_20], %34 {strides = array<i32>} : memref<16x256xf32, #tpu.memory_space<vmem>>, vector<2x256xf32>,
    %36 = vector.extract_strided_slice %2 {offsets = [12, 0], sizes = [2, 256], strides = [1, 1]} : vector<16x256xf32> to vector<2x256xf32>
    %cst_21 = arith.constant dense<0.000000e+00> : vector<2x256xf32>
    %37 = tpu.matmul %34, %3, %cst_21 {dimension_numbers = #tpu.dot_dimension_numbers<[1], [0], [0], [1], [0, 0, 1, 1], [], []>} : vector<2x256xf32>, vector<256x256xf32>, vector<2x256xf32> -> vector<2x256xf32>
    %38 = arith.addf %36, %37 : vector<2x256xf32>
    %39 = math.tanh %38 : vector<2x256xf32>
    %c12 = arith.constant 12 : index
    %c0_22 = arith.constant 0 : index
    %40 = vector.load %arg11[%c12, %c0_22] : memref<16x256xf32, #tpu.memory_space<vmem>>, vector<2x256xf32>
    tpu.vector_store %arg11[%c12, %c0_22], %39 {strides = array<i32>} : memref<16x256xf32, #tpu.memory_space<vmem>>, vector<2x256xf32>,
    %41 = vector.extract_strided_slice %2 {offsets = [14, 0], sizes = [2, 256], strides = [1, 1]} : vector<16x256xf32> to vector<2x256xf32>
    %cst_23 = arith.constant dense<0.000000e+00> : vector<2x256xf32>
    %42 = tpu.matmul %39, %3, %cst_23 {dimension_numbers = #tpu.dot_dimension_numbers<[1], [0], [0], [1], [0, 0, 1, 1], [], []>} : vector<2x256xf32>, vector<256x256xf32>, vector<2x256xf32> -> vector<2x256xf32>
    %43 = arith.addf %41, %42 : vector<2x256xf32>
    %44 = math.tanh %43 : vector<2x256xf32>
    %c14 = arith.constant 14 : index
    %c0_24 = arith.constant 0 : index
    %45 = vector.load %arg11[%c14, %c0_24] : memref<16x256xf32, #tpu.memory_space<vmem>>, vector<2x256xf32>
    tpu.vector_store %arg11[%c14, %c0_24], %44 {strides = array<i32>} : memref<16x256xf32, #tpu.memory_space<vmem>>, vector<2x256xf32>,
    %c0_25 = arith.constant 0 : index
    %c0_26 = arith.constant 0 : index
    %c0_27 = arith.constant 0 : index
    %46 = vector.load %arg9[%c0_25, %c0_26, %c0_27] : memref<1x2x256xf32, #tpu.memory_space<vmem>>, vector<1x2x256xf32>
    %47 = vector.shape_cast %46 : vector<1x2x256xf32> to vector<2x256xf32>
    %48 = vector.shape_cast %44 : vector<2x256xf32> to vector<1x2x256xf32>
    tpu.vector_store %arg9[%c0_25, %c0_26, %c0_27], %48 {strides = array<i32>} : memref<1x2x256xf32, #tpu.memory_space<vmem>>, vector<1x2x256xf32>,
    %c0_28 = arith.constant 0 : index
    %c0_29 = arith.constant 0 : index
    %49 = vector.load %arg11[%c0_28, %c0_29] : memref<16x256xf32, #tpu.memory_space<vmem>>, vector<16x256xf32>
    %c0_30 = arith.constant 0 : index
    %c0_31 = arith.constant 0 : index
    %50 = vector.load %arg4[%c0_30, %c0_31] : memref<256x64xf32, #tpu.memory_space<vmem>>, vector<256x64xf32>
    %cst_32 = arith.constant dense<0.000000e+00> : vector<16x64xf32>
    %51 = tpu.matmul %49, %50, %cst_32 {dimension_numbers = #tpu.dot_dimension_numbers<[1], [0], [0], [1], [0, 0, 1, 1], [], []>} : vector<16x256xf32>, vector<256x64xf32>, vector<16x64xf32> -> vector<16x64xf32>
    %c0_33 = arith.constant 0 : index
    %c0_34 = arith.constant 0 : index
    %52 = vector.load %arg5[%c0_33, %c0_34] : memref<1x64xf32, #tpu.memory_space<vmem>>, vector<1x64xf32>
    %53 = vector.broadcast %52 : vector<1x64xf32> to vector<16x64xf32>
    %54 = arith.addf %51, %53 : vector<16x64xf32>
    %55 = math.tanh %54 : vector<16x64xf32>
    %c0_35 = arith.constant 0 : index
    %c0_36 = arith.constant 0 : index
    %56 = vector.load %arg6[%c0_35, %c0_36] : memref<64x8xf32, #tpu.memory_space<vmem>>, vector<64x8xf32>
    %cst_37 = arith.constant dense<0.000000e+00> : vector<16x8xf32>
    %57 = tpu.matmul %55, %56, %cst_37 {dimension_numbers = #tpu.dot_dimension_numbers<[1], [0], [0], [1], [0, 0, 1, 1], [], []>} : vector<16x64xf32>, vector<64x8xf32>, vector<16x8xf32> -> vector<16x8xf32>
    %c0_38 = arith.constant 0 : index
    %c0_39 = arith.constant 0 : index
    %58 = vector.load %arg7[%c0_38, %c0_39] : memref<1x8xf32, #tpu.memory_space<vmem>>, vector<1x8xf32>
    %59 = vector.broadcast %58 : vector<1x8xf32> to vector<16x8xf32>
    %60 = arith.addf %57, %59 : vector<16x8xf32>
    %c0_40 = arith.constant 0 : index
    %c0_41 = arith.constant 0 : index
    %61 = vector.load %arg10[%c0_40, %c0_41] : memref<16x64xf32, #tpu.memory_space<vmem>>, vector<16x64xf32>
    tpu.vector_store %arg10[%c0_40, %c0_41], %55 {strides = array<i32>} : memref<16x64xf32, #tpu.memory_space<vmem>>, vector<16x64xf32>,
    %c0_42 = arith.constant 0 : index
    %c0_43 = arith.constant 0 : index
    %62 = vector.load %arg8[%c0_42, %c0_43] : memref<16x8xf32, #tpu.memory_space<vmem>>, vector<16x8xf32>
    tpu.vector_store %arg8[%c0_42, %c0_43], %60 {strides = array<i32>} : memref<16x8xf32, #tpu.memory_space<vmem>>, vector<16x8xf32>,
    return
  }
}

</mosaic_0001>

<bundles_post_ra>
// kernel: rnn_arch_2_1_forward.1
= control target key start
LH: loop header
LB: loop body
LE: loop exit
PB: predicated region body
PF: predicated region fallthrough
CT: control target
= control target key end

     0   :  { %v1866_v7 = vmov 0.0   ;;  %s2679_s0 = inlined_call_operand.vmem [shape: f32[16,64], index: 0, kind: input, shape index: {}]   ;;  %s2680_s1 = inlined_call_operand.vmem [shape: f32[1,2,256], index: 1, kind: input, shape index: {}, may-alias: {1,9}]   ;;  %s2681_s2 = inlined_call_operand.vmem [shape: f32[64,256], index: 2, kind: input, shape index: {}]   ;;  %s2682_s3 = inlined_call_operand.vmem [shape: f32[256,256], index: 3, kind: input, shape index: {}]   ;;  %s2683_s4 = inlined_call_operand.vmem [shape: f32[256,64], index: 4, kind: input, shape index: {}]   ;;  %s2684_s5 = inlined_call_operand.vmem [shape: f32[1,64], index: 5, kind: input, shape index: {}]   ;;  %s2685_s6 = inlined_call_operand.vmem [shape: f32[64,8], index: 6, kind: input, shape index: {}]   ;;  %s2686_s7 = inlined_call_operand.vmem [shape: f32[1,8], index: 7, kind: input, shape index: {}]   ;;  %s2687_s8 = inlined_call_operand.vmem [shape: f32[16,8], index: 8, kind: output, shape index: {0}]   ;;  %s2688_s9 = inlined_call_operand.vmem [shape: f32[1,2,256], index: 9, kind: output, shape index: {1}, may-alias: {1,9}]   ;;  %s2689_s10 = inlined_call_operand.hbm [shape: f32[16,64], index: 10, kind: output, shape index: {2}]  }
   0x1   :  { %v136_v0 = vld [vmem:[%s2682_s3 + $0x8] sm:$0xff]  ;;  %v138_v1 = vld [vmem:[%s2682_s3 + $0x18] sm:$0xff]  ;;  %v135_v2 = vld [vmem:[%s2682_s3] sm:$0xff]  ;;  %122 = vmatprep.mubr.f32.mxu0 %v1866_v7 }
   0x2   :  { %v1935_v3 = vpack.c.bf16 %v138_v1, %v136_v0  ;;  %v137_v4 = vld [vmem:[%s2682_s3 + $0x10] sm:$0xff]  ;;  %v140_v5 = vld [vmem:[%s2682_s3 + $0x28] sm:$0xff]  ;;  %v142_v6 = vld [vmem:[%s2682_s3 + $0x38] sm:$0xff] }
   0x3   :  { %v1947_v8 = vpack.c.bf16 %v137_v4, %v135_v2  ;;  %v1949_v9 = vpack.c.bf16 %v142_v6, %v140_v5  ;;  %v139_v10 = vld [vmem:[%s2682_s3 + $0x20] sm:$0xff]  ;;  %v141_v11 = vld [vmem:[%s2682_s3 + $0x30] sm:$0xff]  ;;  %v144_v12 = vld [vmem:[%s2682_s3 + $0x48] sm:$0xff] }
   0x4   :  { %1242 = vmatprep.subr.bf16.mxu1 %v1935_v3  ;;  %v146_v13 = vld [vmem:[%s2682_s3 + $0x58] sm:$0xff]  ;;  %v1965_v14 = vpack.c.bf16 %v141_v11, %v139_v10  ;;  %v143_v16 = vld [vmem:[%s2682_s3 + $0x40] sm:$0xff]  ;;  %v145_v17 = vld [vmem:[%s2682_s3 + $0x50] sm:$0xff] }
   0x5   :  { %1244 = vmatpush1.bf16.msra.mxu1 %v1947_v8  ;;  %v1968_v15 = vpack.c.bf16 %v146_v13, %v144_v12  ;;  %v148_v18 = vld [vmem:[%s2682_s3 + $0x68] sm:$0xff]  ;;  %v150_v19 = vld [vmem:[%s2682_s3 + $0x78] sm:$0xff]  ;;  %v1983_v20 = vpack.c.bf16 %v145_v17, %v143_v16  ;;  %v147_v22 = vld [vmem:[%s2682_s3 + $0x60] sm:$0xff] }
   0x6   :  { %1246 = vmatprep.subr.bf16.mxu1 %v1949_v9  ;;  %v1986_v21 = vpack.c.bf16 %v150_v19, %v148_v18  ;;  %v149_v23 = vld [vmem:[%s2682_s3 + $0x70] sm:$0xff]  ;;  %v152_v24 = vld [vmem:[%s2682_s3 + $0x88] sm:$0xff]  ;;  %v154_v25 = vld [vmem:[%s2682_s3 + $0x98] sm:$0xff] }
   0x7   :  { %v2001_v26 = vpack.c.bf16 %v149_v23, %v147_v22  ;;  %v2004_v27 = vpack.c.bf16 %v154_v25, %v152_v24  ;;  %v151_v28 = vld [vmem:[%s2682_s3 + $0x80] sm:$0xff]  ;;  %v153_v29 = vld [vmem:[%s2682_s3 + $0x90] sm:$0xff]  ;;  %v156_v30 = vld [vmem:[%s2682_s3 + $0xa8] sm:$0xff] }
   0x8   :  { %v158_v31 = vld [vmem:[%s2682_s3 + $0xb8] sm:$0xff]  ;;  %v2019_v32 = vpack.c.bf16 %v153_v29, %v151_v28  ;;  %v36_v33 = vld [vmem:[%s2681_s2 + $0x8] sm:$0xff]  ;;  %v35_v35 = vld [vmem:[%s2681_s2] sm:$0xff] }
   0x9   :  { %1248 = vmatpush1.bf16.msra.mxu1 %v1965_v14  ;;  %v38_v34 = vld [vmem:[%s2681_s2 + $0x18] sm:$0xff]  ;;  %v2031_v36 = vpack.c.bf16 %v158_v31, %v156_v30  ;;  %v155_v37 = vld [vmem:[%s2682_s3 + $0xa0] sm:$0xff]  ;;  %v157_v38 = vld [vmem:[%s2682_s3 + $0xb0] sm:$0xff] }
   0xa   :  { %1250 = vmatprep.subr.bf16.mxu1 %v1968_v15  ;;  %v1225_v39 = vpack.c.bf16 %v38_v34, %v36_v33  ;;  %v37_v40 = vld [vmem:[%s2681_s2 + $0x10] sm:$0xff]  ;;  %v160_v41 = vld [vmem:[%s2682_s3 + $0xc8] sm:$0xff]  ;;  %v162_v42 = vld [vmem:[%s2682_s3 + $0xd8] sm:$0xff]  ;;  %v2061_v48 = vpack.c.bf16 %v157_v38, %v155_v37 }
   0xb   :  { %v1227_v43 = vpack.c.bf16 %v37_v40, %v35_v35  ;;  %v40_v44 = vld [vmem:[%s2681_s2 + $0x28] sm:$0xff]  ;;  %v42_v45 = vld [vmem:[%s2681_s2 + $0x38] sm:$0xff]  ;;  %v39_v46 = vld [vmem:[%s2681_s2 + $0x20] sm:$0xff]  ;;  %v2070_v53 = vpack.c.bf16 %v162_v42, %v160_v41 }
   0xc   :  { %1226 = vmatprep.subr.bf16.mxu0 %v1225_v39  ;;  %v41_v47 = vld [vmem:[%s2681_s2 + $0x30] sm:$0xff]  ;;  %v159_v49 = vld [vmem:[%s2682_s3 + $0xc0] sm:$0xff]  ;;  %v1229_v51 = vpack.c.bf16 %v42_v45, %v40_v44  ;;  %v164_v54 = vld [vmem:[%s2682_s3 + $0xe8] sm:$0xff] }
   0xd   :  { %1252 = vmatpush1.bf16.msra.mxu1 %v1983_v20  ;;  %v161_v50 = vld [vmem:[%s2682_s3 + $0xd0] sm:$0xff]  ;;  %1228 = vmatpush1.bf16.msra.mxu0 %v1227_v43  ;;  %v1231_v52 = vpack.c.bf16 %v41_v47, %v39_v46  ;;  %v44_v55 = vld [vmem:[%s2681_s2 + $0x48] sm:$0xff]  ;;  %v46_v56 = vld [vmem:[%s2681_s2 + $0x58] sm:$0xff] }
   0xe   :  { %1254 = vmatprep.subr.bf16.mxu1 %v1986_v21  ;;  %v166_v57 = vld [vmem:[%s2682_s3 + $0xf8] sm:$0xff]  ;;  %1230 = vmatprep.subr.bf16.mxu0 %v1229_v51  ;;  %v1233_v58 = vpack.c.bf16 %v46_v56, %v44_v55  ;;  %v43_v59 = vld [vmem:[%s2681_s2 + $0x40] sm:$0xff]  ;;  %v45_v60 = vld [vmem:[%s2681_s2 + $0x50] sm:$0xff]  ;;  %v2091_v61 = vpack.c.bf16 %v161_v50, %v159_v49 }
   0xf   :  { %v163_v62 = vld [vmem:[%s2682_s3 + $0xe0] sm:$0xff]  ;;  %v1235_v63 = vpack.c.bf16 %v45_v60, %v43_v59  ;;  %v48_v0 = vld [vmem:[%s2681_s2 + $0x68] sm:$0xff]  ;;  %v50_v1 = vld [vmem:[%s2681_s2 + $0x78] sm:$0xff]  ;;  %v2103_v2 = vpack.c.bf16 %v166_v57, %v164_v54 }
  0x10   :  { %v165_v4 = vld [vmem:[%s2682_s3 + $0xf0] sm:$0xff]  ;;  %v1237_v5 = vpack.c.bf16 %v50_v1, %v48_v0  ;;  %v47_v6 = vld [vmem:[%s2681_s2 + $0x60] sm:$0xff]  ;;  %v168_v11 = vld [vmem:[%s2682_s3 + $0x108] sm:$0xff] }
  0x11   :  { %1256 = vmatpush1.bf16.msra.mxu1 %v2001_v26  ;;  %1232 = vmatpush1.bf16.msra.mxu0 %v1231_v52  ;;  %v49_v10 = vld [vmem:[%s2681_s2 + $0x70] sm:$0xff]  ;;  %v170_v12 = vld [vmem:[%s2682_s3 + $0x118] sm:$0xff]  ;;  %v2123_v13 = vld.sshfl [vmem:[%s2680_s1] sm:$0x33 pattern:$0x76325410] }
  0x12   :  { %1258 = vmatprep.subr.bf16.mxu1 %v2004_v27  ;;  %1234 = vmatprep.subr.bf16.mxu0 %v1233_v58 }
  0x15   :  { %1260 = vmatpush1.bf16.msra.mxu1 %v2019_v32 }
  0x16   :  { %1262 = vmatprep.subr.bf16.mxu1 %v2031_v36 }
  0x19   :  { %1264 = vmatpush1.bf16.msra.mxu1 %v2061_v48 }
  0x1a   :  { %1266 = vmatprep.subr.bf16.mxu1 %v2070_v53 }
  0x1b   :  { %16 = vsyncpa [#allocation4], 0  ;;  %v2126_v16 = vpack.c.bf16 %v165_v4, %v163_v62  ;;  %1236 = vmatpush1.bf16.msra.mxu0 %v1235_v63  ;;  %v1239_v17 = vpack.c.bf16 %v49_v10, %v47_v6  ;;  %v208_v18 = vcombine.high %v2123_v13, %v2123_v13  ;;  %v2131_v19 = vpack.c.bf16 %v170_v12, %v168_v11  ;;  %v167_v22 = vld [vmem:[%s2682_s3 + $0x100] sm:$0xff]  ;;  %v169_v23 = vld [vmem:[%s2682_s3 + $0x110] sm:$0xff]  ;;  %s1868_s18 = smov [#allocation3]  }
  0x1c   :  { %1238 = vmatprep.subr.bf16.mxu0 %v1237_v5  ;;  %v172_v24 = vld [vmem:[%s2682_s3 + $0x128] sm:$0xff]  ;;  %v174_v25 = vld [vmem:[%s2682_s3 + $0x138] sm:$0xff]  ;;  %v2146_v28 = vpack.c.bf16 %v169_v23, %v167_v22  ;;  %v33_v29 = vld [vmem:[%s2679_s0] sm:$0xff]  ;;  %vm51_vm0 = vcmask 523264   ;;  %s1136_s19 = sshll.u32 %s1868_s18, 4  ;;  %s1137_s19 = int_to_ptr.vmem [resolvable:$true] %s1136_s19 }
  0x1d   :  { %1268 = vmatpush1.bf16.msra.mxu1 %v2091_v61  ;;  %275 = vmatprep.mubr.f32.mxu1 %v208_v18  ;;  %v2152_v30 = vpack.c.bf16 %v174_v25, %v172_v24  ;;  %v171_v31 = vld [vmem:[%s2682_s3 + $0x120] sm:$0xff]  ;;  %v173_v33 = vld [vmem:[%s2682_s3 + $0x130] sm:$0xff]  ;;  %v176_v34 = vld [vmem:[%s2682_s3 + $0x148] sm:$0xff]  ;;  %s1842_s20 = scalar_lea.vmem %s1137_s19, 256  ;;  %p1847_p1 = scmp.lt.s32.totalorder %s1137_s19, %s1137_s19 }
  0x1e   :  { %1270 = vmatprep.subr.bf16.mxu1 %v2103_v2  ;;  %v178_v35 = vld [vmem:[%s2682_s3 + $0x158] sm:$0xff]  ;;  %v2169_v37 = vpack.c.bf16 %v173_v33, %v171_v31  ;;  %v175_v39 = vld [vmem:[%s2682_s3 + $0x140] sm:$0xff]  ;;  %v177_v40 = vld [vmem:[%s2682_s3 + $0x150] sm:$0xff]  ;;  %p1843_p0 = scmp.ne.s32.totalorder %s1137_s19, %s1842_s20  ;;  %p1848_p2 = scmp.lt.s32.totalorder %s1842_s20, %s1842_s20 }
  0x1f   :  { %1240 = vmatpush1.bf16.msra.mxu0 %v1239_v17  ;;  %v2173_v38 = vpack.c.bf16 %v178_v35, %v176_v34  ;;  %v180_v41 = vld [vmem:[%s2682_s3 + $0x168] sm:$0xff]  ;;  %v182_v42 = vld [vmem:[%s2682_s3 + $0x178] sm:$0xff]  ;;  %v2190_v43 = vpack.c.bf16 %v177_v40, %v175_v39  ;;  %v179_v45 = vld [vmem:[%s2682_s3 + $0x160] sm:$0xff] }
  0x20   :  { %1306 = vmatprep.subr.bf16.mxu0 %v1935_v3  ;;  %v2194_v44 = vpack.c.bf16 %v182_v42, %v180_v41  ;;  %v181_v46 = vld [vmem:[%s2682_s3 + $0x170] sm:$0xff]  ;;  %v186_v47 = vld [vmem:[%s2682_s3 + $0x198] sm:$0xff]  ;;  %v183_v51 = vld [vmem:[%s2682_s3 + $0x180] sm:$0xff]  ;;  %p1849_p3 = por %p1848_p2, %p1847_p1 }
  0x21   :  { %1272 = vmatpush1.bf16.msra.mxu1 %v2126_v16  ;;  %v2210_v49 = vpack.c.bf16 %v181_v46, %v179_v45  ;;  %v185_v52 = vld [vmem:[%s2682_s3 + $0x190] sm:$0xff]  ;;  %v188_v54 = vld [vmem:[%s2682_s3 + $0x1a8] sm:$0xff]  ;;  %v190_v55 = vld [vmem:[%s2682_s3 + $0x1b8] sm:$0xff] }
  0x22   :  { %1274 = vmatprep.subr.bf16.mxu1 %v2131_v19  ;;  %1151 = vmatmul.mubr.msk.f32.vlgmr.msra.gmra.mrb[0].mxu0 %vm51_vm0, %v33_v29  ;;  %v2230_v56 = vpack.c.bf16 %v185_v52, %v183_v51  ;;  %v2234_v57 = vpack.c.bf16 %v190_v55, %v188_v54  ;;  %v187_v58 = vld [vmem:[%s2682_s3 + $0x1a0] sm:$0xff]  ;;  %v189_v59 = vld [vmem:[%s2682_s3 + $0x1b0] sm:$0xff]  ;;  %v192_v60 = vld [vmem:[%s2682_s3 + $0x1c8] sm:$0xff]  ;;  %p1850_p4 = pnand %p1849_p3, %p1843_p0 }
  0x23   :  { %1308 = vmatpush1.bf16.msra.mxu0 %v1947_v8  ;;  %128 = vmatprep.mubr.f32.mxu0 %v1866_v7  ;;  %v184_v7 = vld [vmem:[%s2682_s3 + $0x188] sm:$0xff]  ;;  %v194_v62 = vld [vmem:[%s2682_s3 + $0x1d8] sm:$0xff]  ;;  %v2250_v63 = vpack.c.bf16 %v189_v59, %v187_v58  ;;  %v191_v1 = vld [vmem:[%s2682_s3 + $0x1c0] sm:$0xff] }
  0x24   :  { %1310 = vmatprep.subr.bf16.mxu0 %v1949_v9  ;;  %v2214_v50 = vpack.c.bf16 %v186_v47, %v184_v7  ;;  %v2254_v0 = vpack.c.bf16 %v194_v62, %v192_v60  ;;  %v193_v4 = vld [vmem:[%s2682_s3 + $0x1d0] sm:$0xff]  ;;  %v196_v5 = vld [vmem:[%s2682_s3 + $0x1e8] sm:$0xff]  ;;  %v198_v6 = vld [vmem:[%s2682_s3 + $0x1f8] sm:$0xff] }
  0x25   :  { %1276 = vmatpush1.bf16.msra.mxu1 %v2146_v28  ;;  %v2270_v10 = vpack.c.bf16 %v193_v4, %v191_v1  ;;  %v2274_v11 = vpack.c.bf16 %v198_v6, %v196_v5  ;;  %v195_v12 = vld [vmem:[%s2682_s3 + $0x1e0] sm:$0xff]  ;;  %v197_v17 = vld [vmem:[%s2682_s3 + $0x1f0] sm:$0xff] }
  0x26   :  { %1278 = vmatprep.subr.bf16.mxu1 %v2152_v30  ;;  %v2284_v18 = vpack.c.bf16 %v197_v17, %v195_v12 }
  0x27   :  { %1312 = vmatpush1.bf16.msra.mxu0 %v1965_v14 }
  0x28   :  { %1314 = vmatprep.subr.bf16.mxu0 %v1968_v15 }
  0x29   :  { %1280 = vmatpush1.bf16.msra.mxu1 %v2169_v37 }
  0x2a   :  { %1282 = vmatprep.subr.bf16.mxu1 %v2173_v38 }
  0x2b   :  { %1316 = vmatpush1.bf16.msra.mxu0 %v1983_v20 }
  0x2c   :  { %1318 = vmatprep.subr.bf16.mxu0 %v1986_v21 }
  0x2d   :  { %1284 = vmatpush1.bf16.msra.mxu1 %v2190_v43 }
  0x2e   :  { %1286 = vmatprep.subr.bf16.mxu1 %v2194_v44 }
  0x2f   :  { %1320 = vmatpush1.bf16.msra.mxu0 %v2001_v26 }
  0x30   :  { %1322 = vmatprep.subr.bf16.mxu0 %v2004_v27 }
  0x31   :  { %1288 = vmatpush1.bf16.msra.mxu1 %v2210_v49 }
  0x32   :  { %1290 = vmatprep.subr.bf16.mxu1 %v2214_v50 }
  0x33   :  { %1324 = vmatpush1.bf16.msra.mxu0 %v2019_v32 }
  0x34   :  { %1326 = vmatprep.subr.bf16.mxu0 %v2031_v36 }
  0x35   :  { %1292 = vmatpush1.bf16.msra.mxu1 %v2230_v56 }
  0x36   :  { %1294 = vmatprep.subr.bf16.mxu1 %v2234_v57 }
  0x37   :  { %1328 = vmatpush1.bf16.msra.mxu0 %v2061_v48 }
  0x38   :  { %1330 = vmatprep.subr.bf16.mxu0 %v2070_v53 }
  0x39   :  { %1296 = vmatpush1.bf16.msra.mxu1 %v2250_v63 }
  0x3a   :  { %1298 = vmatprep.subr.bf16.mxu1 %v2254_v0 }
  0x3b   :  { %1332 = vmatpush1.bf16.msra.mxu0 %v2091_v61 }
  0x3c   :  { %1334 = vmatprep.subr.bf16.mxu0 %v2103_v2 }
  0x3d   :  { %1300 = vmatpush1.bf16.msra.mxu1 %v2270_v10 }
  0x3e   :  { %1302 = vmatprep.subr.bf16.mxu1 %v2274_v11 }
  0x3f   :  { %1336 = vmatpush1.bf16.msra.mxu0 %v2126_v16 }
  0x40   :  { %1338 = vmatprep.subr.bf16.mxu0 %v2131_v19 }
  0x41   :  { %1304 = vmatpush1.bf16.msra.mxu1 %v2284_v18 }
  0x42   :  { %1370 = vmatprep.subr.bf16.mxu1 %v1935_v3 }
  0x43   :  { %1340 = vmatpush1.bf16.msra.mxu0 %v2146_v28 }
  0x44   :  { %276 = vmatmul.mubr.f32.vlgmr.msra.gmra.mrb[0].mxu1 %v2123_v13  ;;  %1342 = vmatprep.subr.bf16.mxu0 %v2152_v30  ;;  %v34_v13 = vld [vmem:[%s2679_s0 + $0x8] sm:$0xff] }
  0x45   :  { %1372 = vmatpush1.bf16.msra.mxu1 %v1947_v8  ;;  %1152 = vmatmul.mubr.msk.f32.gmra.mrb[2].mxu0 %vm51_vm0, %v34_v13 }
  0x46   :  { %1374 = vmatprep.subr.bf16.mxu1 %v1949_v9 }
  0x47   :  { %1344 = vmatpush1.bf16.msra.mxu0 %v2169_v37 }
  0x48   :  { %1346 = vmatprep.subr.bf16.mxu0 %v2173_v38 }
  0x49   :  { %1376 = vmatpush1.bf16.msra.mxu1 %v1965_v14 }
  0x4a   :  { %1378 = vmatprep.subr.bf16.mxu1 %v1968_v15 }
  0x4b   :  { %1348 = vmatpush1.bf16.msra.mxu0 %v2190_v43 }
  0x4c   :  { %1350 = vmatprep.subr.bf16.mxu0 %v2194_v44 }
  0x4d   :  { %1380 = vmatpush1.bf16.msra.mxu1 %v1983_v20 }
  0x4e   :  { %1382 = vmatprep.subr.bf16.mxu1 %v1986_v21 }
  0x4f   :  { %1352 = vmatpush1.bf16.msra.mxu0 %v2210_v49 }
  0x50   :  { %1354 = vmatprep.subr.bf16.mxu0 %v2214_v50 }
  0x51   :  { %1384 = vmatpush1.bf16.msra.mxu1 %v2001_v26 }
  0x52   :  { %1386 = vmatprep.subr.bf16.mxu1 %v2004_v27 }
  0x53   :  { %1356 = vmatpush1.bf16.msra.mxu0 %v2230_v56 }
  0x54   :  { %1358 = vmatprep.subr.bf16.mxu0 %v2234_v57 }
  0x55   :  { %1388 = vmatpush1.bf16.msra.mxu1 %v2019_v32 }
  0x56   :  { %1390 = vmatprep.subr.bf16.mxu1 %v2031_v36 }
  0x57   :  { %1360 = vmatpush1.bf16.msra.mxu0 %v2250_v63 }
  0x58   :  { %1362 = vmatprep.subr.bf16.mxu0 %v2254_v0 }
  0x59   :  { %1392 = vmatpush1.bf16.msra.mxu1 %v2061_v48 }
  0x5a   :  { %1394 = vmatprep.subr.bf16.mxu1 %v2070_v53 }
  0x5b   :  { %1364 = vmatpush1.bf16.msra.mxu0 %v2270_v10 }
  0x5c   :  { %1366 = vmatprep.subr.bf16.mxu0 %v2274_v11 }
  0x5d   :  { %1396 = vmatpush1.bf16.msra.mxu1 %v2091_v61 }
  0x5e   :  { %1398 = vmatprep.subr.bf16.mxu1 %v2103_v2 }
  0x5f   :  { %1368 = vmatpush1.bf16.msra.mxu0 %v2284_v18 }
  0x60   :  { %1434 = vmatprep.subr.bf16.mxu0 %v1935_v3 }
  0x61   :  { %1400 = vmatpush1.bf16.msra.mxu1 %v2126_v16 }
  0x62   :  { %1402 = vmatprep.subr.bf16.mxu1 %v2131_v19 }
  0x65   :  { %1404 = vmatpush1.bf16.msra.mxu1 %v2146_v28 }
  0x66   :  { %1406 = vmatprep.subr.bf16.mxu1 %v2152_v30 }
  0x69   :  { %1408 = vmatpush1.bf16.msra.mxu1 %v2169_v37 }
  0x6a   :  { %1410 = vmatprep.subr.bf16.mxu1 %v2173_v38 }
  0x6d   :  { %1412 = vmatpush1.bf16.msra.mxu1 %v2190_v43 }
  0x6e   :  { %1414 = vmatprep.subr.bf16.mxu1 %v2194_v44 }
  0x71   :  { %1416 = vmatpush1.bf16.msra.mxu1 %v2210_v49 }
  0x72   :  { %1418 = vmatprep.subr.bf16.mxu1 %v2214_v50 }
  0x75   :  { %1420 = vmatpush1.bf16.msra.mxu1 %v2230_v56 }
  0x76   :  { %1422 = vmatprep.subr.bf16.mxu1 %v2234_v57 }
  0x79   :  { %1424 = vmatpush1.bf16.msra.mxu1 %v2250_v63 }
  0x7a   :  { %1426 = vmatprep.subr.bf16.mxu1 %v2254_v0 }
  0x7d   :  { %1428 = vmatpush1.bf16.msra.mxu1 %v2270_v10 }
  0x7e   :  { %1430 = vmatprep.subr.bf16.mxu1 %v2274_v11 }
  0x81   :  { %1432 = vmatpush1.bf16.msra.mxu1 %v2284_v18 }
  0x82   :  { %1498 = vmatprep.subr.bf16.mxu1 %v1935_v3 }
  0xf5   :  { %v2346_v22 = vpop.f32.mrb[0].mxu0 }
  0xf6   :  { %v2348_v23 = vpop.f32.mrb[1].mxu0 }
 0x117   :  { %v277_v24 = vpop.f32.mrb[0].mxu1 }
 0x118   :  { %v282_v25 = vadd.f32 %v277_v24, %v2346_v22  ;;  %v279_v29 = vpop.f32.mrb[1].mxu1  ;;  %v2384_v35 = vpop.f32.mrb[2].mxu0 }
 0x119   :  { %v283_v31 = vadd.f32 %v279_v29, %v2348_v23  ;;  %v2386_v39 = vpop.f32.mrb[3].mxu0 }
 0x11a   :  { %1806 = vtanh.f32 %v282_v25 }
 0x11b   :  { %1808 = vtanh.f32 %v283_v31 }
 0x124   :  { %v1807_v33 = vpop.eup %1806 }
 0x125   :  { %v1809_v34 = vpop.eup %1808  ;;  %286 = vst [vmem:[#allocation2] sm:$0x3] %v1807_v33 }
 0x126   :  { %287 = vst [vmem:[#allocation2 + $0x8] sm:$0x3] %v1809_v34  ;;  %352 = vmatprep.mubr.f32.mxu0 %v1809_v34 }
 0x127   :  { %353 = vmatmul.mubr.f32.vlgmr.msra.gmra.mrb[4].mxu0 %v1807_v33 }
 0x128   :  { %1436 = vmatpush1.bf16.msra.mxu0 %v1947_v8 }
 0x129   :  { %1438 = vmatprep.subr.bf16.mxu0 %v1949_v9 }
 0x12c   :  { %1440 = vmatpush1.bf16.msra.mxu0 %v1965_v14 }
 0x12d   :  { %1442 = vmatprep.subr.bf16.mxu0 %v1968_v15 }
 0x130   :  { %1444 = vmatpush1.bf16.msra.mxu0 %v1983_v20 }
 0x131   :  { %1446 = vmatprep.subr.bf16.mxu0 %v1986_v21 }
 0x134   :  { %1448 = vmatpush1.bf16.msra.mxu0 %v2001_v26 }
 0x135   :  { %1450 = vmatprep.subr.bf16.mxu0 %v2004_v27 }
 0x138   :  { %1452 = vmatpush1.bf16.msra.mxu0 %v2019_v32 }
 0x139   :  { %1454 = vmatprep.subr.bf16.mxu0 %v2031_v36 }
 0x13c   :  { %1456 = vmatpush1.bf16.msra.mxu0 %v2061_v48 }
 0x13d   :  { %1458 = vmatprep.subr.bf16.mxu0 %v2070_v53 }
 0x140   :  { %1460 = vmatpush1.bf16.msra.mxu0 %v2091_v61 }
 0x141   :  { %1462 = vmatprep.subr.bf16.mxu0 %v2103_v2 }
 0x144   :  { %1464 = vmatpush1.bf16.msra.mxu0 %v2126_v16 }
 0x145   :  { %1466 = vmatprep.subr.bf16.mxu0 %v2131_v19 }
 0x148   :  { %1468 = vmatpush1.bf16.msra.mxu0 %v2146_v28 }
 0x149   :  { %1470 = vmatprep.subr.bf16.mxu0 %v2152_v30 }
 0x14c   :  { %1472 = vmatpush1.bf16.msra.mxu0 %v2169_v37 }
 0x14d   :  { %1474 = vmatprep.subr.bf16.mxu0 %v2173_v38 }
 0x150   :  { %1476 = vmatpush1.bf16.msra.mxu0 %v2190_v43 }
 0x151   :  { %1478 = vmatprep.subr.bf16.mxu0 %v2194_v44 }
 0x154   :  { %1480 = vmatpush1.bf16.msra.mxu0 %v2210_v49 }
 0x155   :  { %1482 = vmatprep.subr.bf16.mxu0 %v2214_v50 }
 0x158   :  { %1484 = vmatpush1.bf16.msra.mxu0 %v2230_v56 }
 0x159   :  { %1486 = vmatprep.subr.bf16.mxu0 %v2234_v57 }
 0x15c   :  { %1488 = vmatpush1.bf16.msra.mxu0 %v2250_v63 }
 0x15d   :  { %1490 = vmatprep.subr.bf16.mxu0 %v2254_v0 }
 0x160   :  { %1492 = vmatpush1.bf16.msra.mxu0 %v2270_v10 }
 0x161   :  { %1494 = vmatprep.subr.bf16.mxu0 %v2274_v11 }
 0x164   :  { %1496 = vmatpush1.bf16.msra.mxu0 %v2284_v18 }
 0x165   :  { %1562 = vmatprep.subr.bf16.mxu0 %v1935_v3 }
 0x1fa   :  { %v354_v40 = vpop.f32.mrb[4].mxu0 }
 0x1fb   :  { %v361_v41 = vrot.slane %v354_v40, 6  ;;  %v356_v42 = vpop.f32.mrb[5].mxu0 }
 0x1fc   :  { %v362_v45 = vrot.slane %v356_v42, 6 }
 0x1fd   :  { %v365_v46 = vadd.f32 %v361_v41, %v2346_v22 }
 0x1fe   :  { %v366_v7 = vadd.f32 %v362_v45, %v2348_v23 }
 0x1ff   :  { %1810 = vtanh.f32 %v365_v46 }
 0x200   :  { %1812 = vtanh.f32 %v366_v7 }
 0x209   :  { %v1811_v47 = vpop.eup %1810 }
 0x20a   :  { %v1813_v51 = vpop.eup %1812  ;;  %369 = vst [vmem:[#allocation2] sm:$0xc] %v1811_v47  ;;  %v373_v54 = vrot.slane %v1811_v47, 2  ;;  %v916_v47 = vld [vmem:[%s2683_s4 + $0x30] sm:$0xff] }
 0x20b   :  { %370 = vst [vmem:[#allocation2 + $0x8] sm:$0xc] %v1813_v51  ;;  %v374_v52 = vrot.slane %v1813_v51, 2  ;;  %v917_v51 = vld [vmem:[%s2683_s4 + $0x38] sm:$0xff] }
 0x20d   :  { %441 = vmatprep.mubr.f32.mxu1 %v374_v52  ;;  %v934_v52 = vld [vmem:[%s2683_s4 + $0xc0] sm:$0xff] }
 0x20e   :  { %442 = vmatmul.mubr.f32.vlgmr.msra.gmra.mrb[2].mxu1 %v373_v54  ;;  %v935_v54 = vld [vmem:[%s2683_s4 + $0xc8] sm:$0xff] }
 0x20f   :  { %1500 = vmatpush1.bf16.msra.mxu1 %v1947_v8 }
 0x210   :  { %1502 = vmatprep.subr.bf16.mxu1 %v1949_v9 }
 0x213   :  { %1504 = vmatpush1.bf16.msra.mxu1 %v1965_v14 }
 0x214   :  { %1506 = vmatprep.subr.bf16.mxu1 %v1968_v15 }
 0x217   :  { %1508 = vmatpush1.bf16.msra.mxu1 %v1983_v20 }
 0x218   :  { %1510 = vmatprep.subr.bf16.mxu1 %v1986_v21 }
 0x21b   :  { %1512 = vmatpush1.bf16.msra.mxu1 %v2001_v26 }
 0x21c   :  { %1514 = vmatprep.subr.bf16.mxu1 %v2004_v27 }
 0x21f   :  { %1516 = vmatpush1.bf16.msra.mxu1 %v2019_v32 }
 0x220   :  { %1518 = vmatprep.subr.bf16.mxu1 %v2031_v36 }
 0x223   :  { %1520 = vmatpush1.bf16.msra.mxu1 %v2061_v48 }
 0x224   :  { %1522 = vmatprep.subr.bf16.mxu1 %v2070_v53 }
 0x227   :  { %1524 = vmatpush1.bf16.msra.mxu1 %v2091_v61 }
 0x228   :  { %1526 = vmatprep.subr.bf16.mxu1 %v2103_v2 }
 0x22b   :  { %1528 = vmatpush1.bf16.msra.mxu1 %v2126_v16 }
 0x22c   :  { %1530 = vmatprep.subr.bf16.mxu1 %v2131_v19 }
 0x22f   :  { %1532 = vmatpush1.bf16.msra.mxu1 %v2146_v28 }
 0x230   :  { %1534 = vmatprep.subr.bf16.mxu1 %v2152_v30 }
 0x233   :  { %1536 = vmatpush1.bf16.msra.mxu1 %v2169_v37 }
 0x234   :  { %1538 = vmatprep.subr.bf16.mxu1 %v2173_v38 }
 0x237   :  { %1540 = vmatpush1.bf16.msra.mxu1 %v2190_v43 }
 0x238   :  { %1542 = vmatprep.subr.bf16.mxu1 %v2194_v44 }
 0x23b   :  { %1544 = vmatpush1.bf16.msra.mxu1 %v2210_v49 }
 0x23c   :  { %1546 = vmatprep.subr.bf16.mxu1 %v2214_v50 }
 0x23f   :  { %1548 = vmatpush1.bf16.msra.mxu1 %v2230_v56 }
 0x240   :  { %1550 = vmatprep.subr.bf16.mxu1 %v2234_v57 }
 0x243   :  { %1552 = vmatpush1.bf16.msra.mxu1 %v2250_v63 }
 0x244   :  { %1554 = vmatprep.subr.bf16.mxu1 %v2254_v0 }
 0x247   :  { %1556 = vmatpush1.bf16.msra.mxu1 %v2270_v10 }
 0x248   :  { %1558 = vmatprep.subr.bf16.mxu1 %v2274_v11 }
 0x24b   :  { %1560 = vmatpush1.bf16.msra.mxu1 %v2284_v18 }
 0x24c   :  { %1626 = vmatprep.subr.bf16.mxu1 %v1935_v3 }
 0x2e1   :  { %v443_v55 = vpop.f32.mrb[2].mxu1 }
 0x2e2   :  { %v450_v58 = vrot.slane %v443_v55, 4  ;;  %v445_v59 = vpop.f32.mrb[3].mxu1  ;;  %v1767_v55 = vpack.c.bf16 %v917_v51, %v916_v47  ;;  %v1027_v47 = vld [vmem:[%s2685_s6 + $0x8] sm:$0xff] }
 0x2e3   :  { %v451_v60 = vrot.slane %v445_v59, 4  ;;  %v918_v59 = vld [vmem:[%s2683_s4 + $0x40] sm:$0xff] }
 0x2e4   :  { %v454_v62 = vadd.f32 %v450_v58, %v2346_v22  ;;  %v1769_v58 = vpack.c.bf16 %v935_v54, %v934_v52  ;;  %v1028_v52 = vld [vmem:[%s2685_s6 + $0x10] sm:$0xff]  ;;  %v1029_v54 = vld [vmem:[%s2685_s6 + $0x18] sm:$0xff] }
 0x2e5   :  { %v455_v1 = vadd.f32 %v451_v60, %v2348_v23  ;;  %v919_v60 = vld [vmem:[%s2683_s4 + $0x48] sm:$0xff] }
 0x2e6   :  { %1814 = vtanh.f32 %v454_v62  ;;  %v936_v62 = vld [vmem:[%s2683_s4 + $0xd0] sm:$0xff] }
 0x2e7   :  { %1816 = vtanh.f32 %v455_v1  ;;  %v937_v1 = vld [vmem:[%s2683_s4 + $0xd8] sm:$0xff] }
 0x2f0   :  { %v1815_v4 = vpop.eup %1814 }
 0x2f1   :  { %v1817_v5 = vpop.eup %1816  ;;  %458 = vst [vmem:[#allocation2] sm:$0x30] %v1815_v4  ;;  %v462_v12 = vrot.slane %v1815_v4, 4  ;;  %v1771_v4 = vpack.c.bf16 %v919_v60, %v918_v59  ;;  %v1031_v59 = vld [vmem:[%s2685_s6 + $0x28] sm:$0xff] }
 0x2f2   :  { %459 = vst [vmem:[#allocation2 + $0x8] sm:$0x30] %v1817_v5  ;;  %v463_v6 = vrot.slane %v1817_v5, 4  ;;  %v1773_v5 = vpack.c.bf16 %v937_v1, %v936_v62  ;;  %v1032_v62 = vld [vmem:[%s2685_s6 + $0x30] sm:$0xff]  ;;  %v1033_v1 = vld [vmem:[%s2685_s6 + $0x38] sm:$0xff] }
 0x2f4   :  { %530 = vmatprep.mubr.f32.mxu0 %v463_v6  ;;  %v920_v6 = vld [vmem:[%s2683_s4 + $0x50] sm:$0xff] }
 0x2f5   :  { %531 = vmatmul.mubr.f32.vlgmr.msra.gmra.mrb[6].mxu0 %v462_v12  ;;  %v921_v12 = vld [vmem:[%s2683_s4 + $0x58] sm:$0xff] }
 0x2f6   :  { %1564 = vmatpush1.bf16.msra.mxu0 %v1947_v8 }
 0x2f7   :  { %1566 = vmatprep.subr.bf16.mxu0 %v1949_v9 }
 0x2fa   :  { %1568 = vmatpush1.bf16.msra.mxu0 %v1965_v14 }
 0x2fb   :  { %1570 = vmatprep.subr.bf16.mxu0 %v1968_v15 }
 0x2fe   :  { %1572 = vmatpush1.bf16.msra.mxu0 %v1983_v20 }
 0x2ff   :  { %1574 = vmatprep.subr.bf16.mxu0 %v1986_v21 }
 0x302   :  { %1576 = vmatpush1.bf16.msra.mxu0 %v2001_v26 }
 0x303   :  { %1578 = vmatprep.subr.bf16.mxu0 %v2004_v27 }
 0x306   :  { %1580 = vmatpush1.bf16.msra.mxu0 %v2019_v32 }
 0x307   :  { %1582 = vmatprep.subr.bf16.mxu0 %v2031_v36 }
 0x30a   :  { %1584 = vmatpush1.bf16.msra.mxu0 %v2061_v48 }
 0x30b   :  { %1586 = vmatprep.subr.bf16.mxu0 %v2070_v53 }
 0x30e   :  { %1588 = vmatpush1.bf16.msra.mxu0 %v2091_v61 }
 0x30f   :  { %1590 = vmatprep.subr.bf16.mxu0 %v2103_v2 }
 0x312   :  { %1592 = vmatpush1.bf16.msra.mxu0 %v2126_v16 }
 0x313   :  { %1594 = vmatprep.subr.bf16.mxu0 %v2131_v19 }
 0x316   :  { %1596 = vmatpush1.bf16.msra.mxu0 %v2146_v28 }
 0x317   :  { %1598 = vmatprep.subr.bf16.mxu0 %v2152_v30 }
 0x31a   :  { %1600 = vmatpush1.bf16.msra.mxu0 %v2169_v37 }
 0x31b   :  { %1602 = vmatprep.subr.bf16.mxu0 %v2173_v38 }
 0x31e   :  { %1604 = vmatpush1.bf16.msra.mxu0 %v2190_v43 }
 0x31f   :  { %1606 = vmatprep.subr.bf16.mxu0 %v2194_v44 }
 0x322   :  { %1608 = vmatpush1.bf16.msra.mxu0 %v2210_v49 }
 0x323   :  { %1610 = vmatprep.subr.bf16.mxu0 %v2214_v50 }
 0x326   :  { %1612 = vmatpush1.bf16.msra.mxu0 %v2230_v56 }
 0x327   :  { %1614 = vmatprep.subr.bf16.mxu0 %v2234_v57 }
 0x32a   :  { %1616 = vmatpush1.bf16.msra.mxu0 %v2250_v63 }
 0x32b   :  { %1618 = vmatprep.subr.bf16.mxu0 %v2254_v0 }
 0x32e   :  { %1620 = vmatpush1.bf16.msra.mxu0 %v2270_v10 }
 0x32f   :  { %1622 = vmatprep.subr.bf16.mxu0 %v2274_v11 }
 0x332   :  { %1624 = vmatpush1.bf16.msra.mxu0 %v2284_v18 }
 0x333   :  { %1690 = vmatprep.subr.bf16.mxu0 %v1935_v3 }
 0x3c8   :  { %v532_v17 = vpop.f32.mrb[6].mxu0 }
 0x3c9   :  { %v539_v13 = vrot.slane %v532_v17, 2  ;;  %v534_v24 = vpop.f32.mrb[7].mxu0  ;;  %v938_v17 = vld [vmem:[%s2683_s4 + $0xe0] sm:$0xff] }
 0x3ca   :  { %v540_v25 = vrot.slane %v534_v24, 2  ;;  %v1775_v24 = vpack.c.bf16 %v921_v12, %v920_v6 }
 0x3cb   :  { %v543_v29 = vadd.f32 %v539_v13, %v2346_v22  ;;  %v939_v13 = vld [vmem:[%s2683_s4 + $0xe8] sm:$0xff] }
 0x3cc   :  { %v544_v31 = vadd.f32 %v540_v25, %v2348_v23  ;;  %v1777_v25 = vpack.c.bf16 %v939_v13, %v938_v17 }
 0x3cd   :  { %1818 = vtanh.f32 %v543_v29  ;;  %v922_v29 = vld [vmem:[%s2683_s4 + $0x60] sm:$0xff] }
 0x3ce   :  { %1820 = vtanh.f32 %v544_v31  ;;  %v923_v31 = vld [vmem:[%s2683_s4 + $0x68] sm:$0xff] }
 0x3d7   :  { %v1819_v33 = vpop.eup %1818 }
 0x3d8   :  { %v1821_v34 = vpop.eup %1820  ;;  %547 = vst [vmem:[#allocation2] sm:$0xc0] %v1819_v33  ;;  %v551_v41 = vrot.slane %v1819_v33, 6  ;;  %v940_v33 = vld [vmem:[%s2683_s4 + $0xf0] sm:$0xff] }
 0x3d9   :  { %548 = vst [vmem:[#allocation2 + $0x8] sm:$0xc0] %v1821_v34  ;;  %v552_v40 = vrot.slane %v1821_v34, 6  ;;  %v941_v34 = vld [vmem:[%s2683_s4 + $0xf8] sm:$0xff] }
 0x3db   :  { %619 = vmatprep.mubr.f32.mxu1 %v552_v40  ;;  %v1779_v40 = vpack.c.bf16 %v923_v31, %v922_v29 }
 0x3dc   :  { %620 = vmatmul.mubr.f32.vlgmr.msra.gmra.mrb[4].mxu1 %v551_v41  ;;  %v1781_v41 = vpack.c.bf16 %v941_v34, %v940_v33 }
 0x3dd   :  { %1628 = vmatpush1.bf16.msra.mxu1 %v1947_v8 }
 0x3de   :  { %1630 = vmatprep.subr.bf16.mxu1 %v1949_v9 }
 0x3e1   :  { %1632 = vmatpush1.bf16.msra.mxu1 %v1965_v14 }
 0x3e2   :  { %1634 = vmatprep.subr.bf16.mxu1 %v1968_v15 }
 0x3e5   :  { %1636 = vmatpush1.bf16.msra.mxu1 %v1983_v20 }
 0x3e6   :  { %1638 = vmatprep.subr.bf16.mxu1 %v1986_v21 }
 0x3e9   :  { %1640 = vmatpush1.bf16.msra.mxu1 %v2001_v26 }
 0x3ea   :  { %1642 = vmatprep.subr.bf16.mxu1 %v2004_v27 }
 0x3ed   :  { %1644 = vmatpush1.bf16.msra.mxu1 %v2019_v32 }
 0x3ee   :  { %1646 = vmatprep.subr.bf16.mxu1 %v2031_v36 }
 0x3f1   :  { %1648 = vmatpush1.bf16.msra.mxu1 %v2061_v48 }
 0x3f2   :  { %1650 = vmatprep.subr.bf16.mxu1 %v2070_v53 }
 0x3f5   :  { %1652 = vmatpush1.bf16.msra.mxu1 %v2091_v61 }
 0x3f6   :  { %1654 = vmatprep.subr.bf16.mxu1 %v2103_v2 }
 0x3f9   :  { %1656 = vmatpush1.bf16.msra.mxu1 %v2126_v16 }
 0x3fa   :  { %1658 = vmatprep.subr.bf16.mxu1 %v2131_v19 }
 0x3fd   :  { %1660 = vmatpush1.bf16.msra.mxu1 %v2146_v28 }
 0x3fe   :  { %1662 = vmatprep.subr.bf16.mxu1 %v2152_v30 }
 0x401   :  { %1664 = vmatpush1.bf16.msra.mxu1 %v2169_v37 }
 0x402   :  { %1666 = vmatprep.subr.bf16.mxu1 %v2173_v38 }
 0x405   :  { %1668 = vmatpush1.bf16.msra.mxu1 %v2190_v43 }
 0x406   :  { %1670 = vmatprep.subr.bf16.mxu1 %v2194_v44 }
 0x409   :  { %1672 = vmatpush1.bf16.msra.mxu1 %v2210_v49 }
 0x40a   :  { %1674 = vmatprep.subr.bf16.mxu1 %v2214_v50 }
 0x40d   :  { %1676 = vmatpush1.bf16.msra.mxu1 %v2230_v56 }
 0x40e   :  { %1678 = vmatprep.subr.bf16.mxu1 %v2234_v57 }
 0x411   :  { %1680 = vmatpush1.bf16.msra.mxu1 %v2250_v63 }
 0x412   :  { %1682 = vmatprep.subr.bf16.mxu1 %v2254_v0 }
 0x415   :  { %1684 = vmatpush1.bf16.msra.mxu1 %v2270_v10 }
 0x416   :  { %1686 = vmatprep.subr.bf16.mxu1 %v2274_v11 }
 0x419   :  { %1688 = vmatpush1.bf16.msra.mxu1 %v2284_v18 }
 0x4af   :  { %v621_v3 = vpop.f32.mrb[4].mxu1 }
 0x4b0   :  { %v626_v22 = vadd.f32 %v621_v3, %v2384_v35  ;;  %v623_v23 = vpop.f32.mrb[5].mxu1  ;;  %v924_v3 = vld [vmem:[%s2683_s4 + $0x70] sm:$0xff] }
 0x4b1   :  { %v627_v42 = vadd.f32 %v623_v23, %v2386_v39 }
 0x4b2   :  { %1822 = vtanh.f32 %v626_v22  ;;  %v925_v22 = vld [vmem:[%s2683_s4 + $0x78] sm:$0xff] }
 0x4b3   :  { %1824 = vtanh.f32 %v627_v42  ;;  %v1783_v23 = vpack.c.bf16 %v925_v22, %v924_v3  ;;  %v906_v42 = vld [vmem:[#allocation2] sm:$0xff] }
 0x4bc   :  { %v1823_v45 = vpop.eup %1822 }
 0x4bd   :  { %v1825_v46 = vpop.eup %1824  ;;  %630 = vst [vmem:[#allocation2 + $0x10] sm:$0x3] %v1823_v45 }
 0x4be   :  { %631 = vst [vmem:[#allocation2 + $0x18] sm:$0x3] %v1825_v46  ;;  %696 = vmatprep.mubr.f32.mxu0 %v1825_v46 }
 0x4bf   :  { %697 = vmatmul.mubr.f32.vlgmr.msra.gmra.mrb[8].mxu0 %v1823_v45 }
 0x4c0   :  { %1692 = vmatpush1.bf16.msra.mxu0 %v1947_v8  ;;  %v926_v8 = vld [vmem:[%s2683_s4 + $0x80] sm:$0xff] }
 0x4c1   :  { %1694 = vmatprep.subr.bf16.mxu0 %v1949_v9  ;;  %v927_v9 = vld [vmem:[%s2683_s4 + $0x88] sm:$0xff] }
 0x4c4   :  { %1696 = vmatpush1.bf16.msra.mxu0 %v1965_v14  ;;  %v1753_v14 = vpack.c.bf16 %v927_v9, %v926_v8 }
 0x4c5   :  { %1698 = vmatprep.subr.bf16.mxu0 %v1968_v15 }
 0x4c6   :  { %1754 = vmatprep.subr.bf16.mxu1 %v1753_v14 }
 0x4c8   :  { %1700 = vmatpush1.bf16.msra.mxu0 %v1983_v20 }
 0x4c9   :  { %1702 = vmatprep.subr.bf16.mxu0 %v1986_v21 }
 0x4cc   :  { %1704 = vmatpush1.bf16.msra.mxu0 %v2001_v26 }
 0x4cd   :  { %1706 = vmatprep.subr.bf16.mxu0 %v2004_v27 }
 0x4d0   :  { %1708 = vmatpush1.bf16.msra.mxu0 %v2019_v32 }
 0x4d1   :  { %1710 = vmatprep.subr.bf16.mxu0 %v2031_v36  ;;  %v910_v36 = vld [vmem:[%s2683_s4] sm:$0xff] }
 0x4d4   :  { %1712 = vmatpush1.bf16.msra.mxu0 %v2061_v48  ;;  %v911_v48 = vld [vmem:[%s2683_s4 + $0x8] sm:$0xff] }
 0x4d5   :  { %1714 = vmatprep.subr.bf16.mxu0 %v2070_v53 }
 0x4d8   :  { %1716 = vmatpush1.bf16.msra.mxu0 %v2091_v61  ;;  %v928_v61 = vld [vmem:[%s2683_s4 + $0x90] sm:$0xff] }
 0x4d9   :  { %1718 = vmatprep.subr.bf16.mxu0 %v2103_v2  ;;  %v929_v2 = vld [vmem:[%s2683_s4 + $0x98] sm:$0xff] }
 0x4dc   :  { %1720 = vmatpush1.bf16.msra.mxu0 %v2126_v16 }
 0x4dd   :  { %1722 = vmatprep.subr.bf16.mxu0 %v2131_v19 }
 0x4e0   :  { %1724 = vmatpush1.bf16.msra.mxu0 %v2146_v28  ;;  %v1755_v28 = vpack.c.bf16 %v911_v48, %v910_v36  ;;  %v1154_v36 = vld [vmem:[%s2684_s5] ss:$0 sm:$0xff] }
 0x4e1   :  { %1726 = vmatprep.subr.bf16.mxu0 %v2152_v30 }
 0x4e4   :  { %1728 = vmatpush1.bf16.msra.mxu0 %v2169_v37  ;;  %v1757_v37 = vpack.c.bf16 %v929_v2, %v928_v61 }
 0x4e5   :  { %1730 = vmatprep.subr.bf16.mxu0 %v2173_v38  ;;  %v912_v38 = vld [vmem:[%s2683_s4 + $0x10] sm:$0xff] }
 0x4e8   :  { %1732 = vmatpush1.bf16.msra.mxu0 %v2190_v43  ;;  %v913_v43 = vld [vmem:[%s2683_s4 + $0x18] sm:$0xff] }
 0x4e9   :  { %1734 = vmatprep.subr.bf16.mxu0 %v2194_v44  ;;  %v930_v44 = vld [vmem:[%s2683_s4 + $0xa0] sm:$0xff] }
 0x4ec   :  { %1736 = vmatpush1.bf16.msra.mxu0 %v2210_v49  ;;  %v931_v49 = vld [vmem:[%s2683_s4 + $0xa8] sm:$0xff] }
 0x4ed   :  { %1738 = vmatprep.subr.bf16.mxu0 %v2214_v50  ;;  %v907_v50 = vld [vmem:[#allocation2 + $0x8] sm:$0xff] }
 0x4f0   :  { %1740 = vmatpush1.bf16.msra.mxu0 %v2230_v56  ;;  %v1759_v56 = vpack.c.bf16 %v913_v43, %v912_v38  ;;  %v1867_v43 = vmov 1983009808  }
 0x4f1   :  { %1742 = vmatprep.subr.bf16.mxu0 %v2234_v57  ;;  %v1761_v57 = vpack.c.bf16 %v931_v49, %v930_v44  ;;  %v897_v44 = vunpack.c.l.s4 %v1867_v43  ;;  %v899_v49 = vlaneseq }
 0x4f4   :  { %1744 = vmatpush1.bf16.msra.mxu0 %v2250_v63  ;;  %v914_v63 = vld [vmem:[%s2683_s4 + $0x20] sm:$0xff] }
 0x4f5   :  { %1746 = vmatprep.subr.bf16.mxu0 %v2254_v0  ;;  %v915_v0 = vld [vmem:[%s2683_s4 + $0x28] sm:$0xff] }
 0x4f8   :  { %1748 = vmatpush1.bf16.msra.mxu0 %v2270_v10  ;;  %v932_v10 = vld [vmem:[%s2683_s4 + $0xb0] sm:$0xff] }
 0x4f9   :  { %1750 = vmatprep.subr.bf16.mxu0 %v2274_v11  ;;  %v933_v11 = vld [vmem:[%s2683_s4 + $0xb8] sm:$0xff] }
 0x4fa   :  { %v1765_v7 = vpack.c.bf16 %v933_v11, %v932_v10 }
 0x4fc   :  { %1752 = vmatpush1.bf16.msra.mxu0 %v2284_v18  ;;  %v1763_v18 = vpack.c.bf16 %v915_v0, %v914_v63 }
 0x592   :  { %v698_v15 = vpop.f32.mrb[8].mxu0 }
 0x593   :  { %v705_v20 = vrot.slane %v698_v15, 6  ;;  %v700_v21 = vpop.f32.mrb[9].mxu0 }
 0x594   :  { %v706_v26 = vrot.slane %v700_v21, 6 }
 0x595   :  { %v709_v27 = vadd.f32 %v705_v20, %v2384_v35 }
 0x596   :  { %v710_v32 = vadd.f32 %v706_v26, %v2386_v39 }
 0x597   :  { %1826 = vtanh.f32 %v709_v27 }
 0x598   :  { %1828 = vtanh.f32 %v710_v32 }
 0x5a1   :  { %v1827_v53 = vpop.eup %1826 }
 0x5a2   :  { %v1829_v16 = vpop.eup %1828  ;;  %713 = vst [vmem:[#allocation2 + $0x10] sm:$0xc] %v1827_v53  ;;  %v717_v30 = vrot.slane %v1827_v53, 2 }
 0x5a3   :  { %714 = vst [vmem:[#allocation2 + $0x18] sm:$0xc] %v1829_v16  ;;  %v718_v19 = vrot.slane %v1829_v16, 2 }
 0x5a5   :  { %785 = vmatprep.mubr.f32.mxu1 %v718_v19 }
 0x5a6   :  { %786 = vmatmul.mubr.f32.vlgmr.msra.gmra.mrb[6].mxu1 %v717_v30 }
 0x5a7   :  { %1756 = vmatpush3.bf16.msra.mxu1 %v1755_v28  ;;  %1013 = vmatprep.mubr.f32.mxu1 %v907_v50  ;;  %v898_v50 = vunpack.c.0.s8 %v897_v44 }
 0x5a8   :  { %1758 = vmatprep.subr.bf16.mxu1 %v1757_v37 }
 0x5ab   :  { %1760 = vmatpush3.bf16.msra.mxu1 %v1759_v56  ;;  %v900_v56 = vshrl.u32 %v899_v49, 7 }
 0x5ac   :  { %1762 = vmatprep.subr.bf16.mxu1 %v1761_v57 }
 0x5ad   :  { %v901_v63 = vsub.s32 %v898_v50, %v900_v56 }
 0x5af   :  { %1764 = vmatpush3.bf16.msra.mxu1 %v1763_v18 }
 0x5b0   :  { %1766 = vmatprep.subr.bf16.mxu1 %v1765_v7  ;;  %v1026_v7 = vld [vmem:[%s2685_s6] sm:$0xff] }
 0x5b1   :  { %v1785_v51 = vpack.c.bf16 %v1027_v47, %v1026_v7 }
 0x5b3   :  { %1768 = vmatpush3.bf16.msra.mxu1 %v1767_v55  ;;  %1786 = vmatprep.subr.bf16.mxu0 %v1785_v51  ;;  %v1789_v55 = vpack.c.bf16 %v1029_v54, %v1028_v52 }
 0x5b4   :  { %1770 = vmatprep.subr.bf16.mxu1 %v1769_v58  ;;  %v1030_v58 = vld [vmem:[%s2685_s6 + $0x20] sm:$0xff] }
 0x5b5   :  { %v1793_v60 = vpack.c.bf16 %v1031_v59, %v1030_v58 }
 0x5b7   :  { %1772 = vmatpush3.bf16.msra.mxu1 %v1771_v4  ;;  %v1797_v4 = vpack.c.bf16 %v1033_v1, %v1032_v62 }
 0x5b8   :  { %1774 = vmatprep.subr.bf16.mxu1 %v1773_v5 }
 0x5bb   :  { %1776 = vmatpush3.bf16.msra.mxu1 %v1775_v24 }
 0x5bc   :  { %1778 = vmatprep.subr.bf16.mxu1 %v1777_v25 }
 0x5bf   :  { %1780 = vmatpush3.bf16.msra.mxu1 %v1779_v40 }
 0x5c0   :  { %1782 = vmatprep.subr.bf16.mxu1 %v1781_v41 }
 0x5c3   :  { %1784 = vmatpush3.bf16.msra.mxu1 %v1783_v23 }
 0x5c6   :  { %1014 = vmatmul.mubr.f32.vlgmr.msra.gmra.mrb[8].mxu1 %v906_v42 }
 0x679   :  { %v787_v45 = vpop.f32.mrb[6].mxu1 }
 0x67a   :  { %v794_v46 = vrot.slane %v787_v45, 4  ;;  %v789_v8 = vpop.f32.mrb[7].mxu1 }
 0x67b   :  { %v795_v9 = vrot.slane %v789_v8, 4 }
 0x67c   :  { %v798_v14 = vadd.f32 %v794_v46, %v2384_v35 }
 0x67d   :  { %v799_v15 = vadd.f32 %v795_v9, %v2386_v39 }
 0x67e   :  { %1830 = vtanh.f32 %v798_v14 }
 0x67f   :  { %1832 = vtanh.f32 %v799_v15 }
 0x688   :  { %v1831_v20 = vpop.eup %1830 }
 0x689   :  { %v1833_v21 = vpop.eup %1832  ;;  %802 = vst [vmem:[#allocation2 + $0x10] sm:$0x30] %v1831_v20  ;;  %v806_v27 = vrot.slane %v1831_v20, 4 }
 0x68a   :  { %803 = vst [vmem:[#allocation2 + $0x18] sm:$0x30] %v1833_v21  ;;  %v807_v26 = vrot.slane %v1833_v21, 4 }
 0x68c   :  { %874 = vmatprep.mubr.f32.mxu0 %v807_v26 }
 0x68d   :  { %875 = vmatmul.mubr.f32.vlgmr.msra.gmra.mrb[10].mxu0 %v806_v27 }
 0x68e   :  { %1788 = vmatpush3.bf16.msra.mxu0 %v1785_v51 }
 0x68f   :  { %1790 = vmatprep.subr.bf16.mxu0 %v1789_v55 }
 0x692   :  { %1792 = vmatpush3.bf16.msra.mxu0 %v1789_v55 }
 0x693   :  { %1794 = vmatprep.subr.bf16.mxu0 %v1793_v60 }
 0x696   :  { %1796 = vmatpush3.bf16.msra.mxu0 %v1793_v60 }
 0x697   :  { %1798 = vmatprep.subr.bf16.mxu0 %v1797_v4 }
 0x699   :  { %v1190_v32 = vpop.f32.mrb[8].mxu1 }
 0x69a   :  { %v1191_v48 = vpop.f32.mrb[9].mxu1  ;;  %1800 = vmatpush3.bf16.msra.mxu0 %v1797_v4 }
 0x69b   :  { %v1192_v53 = vadd.f32 %v1191_v48, %v1190_v32 }
 0x69d   :  { %v1016_v61 = vadd.f32 %v1192_v53, %v1154_v36 }
 0x69f   :  { %1834 = vtanh.f32 %v1016_v61 }
 0x6a9   :  { %v1835_v2 = vpop.eup %1834 }
 0x6aa   :  { %1122 = vst.msk [vmem:[#allocation3] sm:$0xff] %vm51_vm0, %v1835_v2  ;;  %1222 = vmatprep.mubr.msk.f32.mxu0 %vm51_vm0, %v1835_v2 }
 0x760   :  { %v876_v16 = vpop.f32.mrb[10].mxu0 }
 0x761   :  { %v883_v19 = vrot.slane %v876_v16, 2  ;;  %v878_v28 = vpop.f32.mrb[11].mxu0 }
 0x762   :  { %v884_v30 = vrot.slane %v878_v28, 2 }
 0x763   :  { %v887_v37 = vadd.f32 %v883_v19, %v2384_v35 }
 0x764   :  { %v888_v38 = vadd.f32 %v884_v30, %v2386_v39 }
 0x765   :  { %1836 = vtanh.f32 %v887_v37 }
 0x766   :  { %1838 = vtanh.f32 %v888_v38 }
 0x76f   :  { %v1837_v57 = vpop.eup %1836 }
 0x770   :  { %v1839_v0 = vpop.eup %1838  ;;  %891 = vst [vmem:[#allocation2 + $0x10] sm:$0xc0] %v1837_v57 }
 0x771   :  { %892 = vst [vmem:[#allocation2 + $0x18] sm:$0xc0] %v1839_v0  ;;  %v895_v10 = vcombine.high %v1837_v57, %v1839_v0 }
 0x773   :  { %v902_v11 = vrot.slane %v895_v10, %v901_v63 }
 0x775   :  { %v903_v18 = vcombine.high %v902_v11, %v902_v11 }
 0x777   :  { %905 = vst [vmem:[%s2688_s9] sm:$0xf] %v903_v18  ;;  %v908_v39 = vld [vmem:[#allocation2 + $0x10] sm:$0xff] }
 0x778   :  { %v909_v35 = vld [vmem:[#allocation2 + $0x18] sm:$0xff] }
 0x779   :  { %1018 = vmatprep.mubr.f32.mxu1 %v909_v35 }
 0x77a   :  { %1019 = vmatmul.mubr.f32.gmra.mrb[10].mxu1 %v908_v39 }
 0x84d   :  { %v1193_v5 = vpop.f32.mrb[10].mxu1 }
 0x84e   :  { %v1194_v6 = vpop.f32.mrb[11].mxu1 }
 0x84f   :  { %v1195_v12 = vadd.f32 %v1194_v6, %v1193_v5 }
 0x851   :  { %v1021_v17 = vadd.f32 %v1195_v12, %v1154_v36 }
 0x853   :  { %1840 = vtanh.f32 %v1021_v17 }
 0x85d   :  { %v1841_v13 = vpop.eup %1840 }
 0x85e   :  { %1123 = vst.msk [vmem:[#allocation3 + $0x8] sm:$0xff] %vm51_vm0, %v1841_v13  ;;  %1223 = vmatmul.mubr.msk.f32.vlgmr.msra.gmra.mrb[12].mxu0 %vm51_vm0, %v1841_v13 }
 0x85f   :  { %1853 = shalt.err (!%p1850_p4)
}
 0x860   :  { %s1854_s22 = scalar_lea.hbm %s2689_s10, 256 }
 0x861   :  { %p1855_p5 = scmp.ne.s32.totalorder %s2689_s10, %s1854_s22  ;;  %p1858_p6 = scmp.lt.u32.totalorder %s1854_s22, %s2689_s10 }
 0x863   :  { %p1860_p7 = pnand %p1858_p6, %p1855_p5 }
 0x865   :  { %1863 = shalt.err (!%p1860_p7)
}
 0x866   :  { %s1869_s5 = smov 128   ;;  %s1870_s26 = smov 8   ;;  %v1155_v24 = vld [vmem:[%s2686_s7] ss:$0 sm:$0xff]  ;;  %vm1124_vm1 = vcmask 64512  }
 0x867   :  { %1142 = dma.vmem_to_hbm [thread:$0]  %s1137_s19, 256, %s2689_s10, [#allocation4], %s1869_s5, %s1869_s5, %s1870_s26  }
 0x931   :  { %v1224_v25 = vpop.f32.mrb[12].mxu0 }
 0x932   :  { %v1119_v29 = vadd.f32 %v1224_v25, %v1155_v24  ;;  %v1113_v31 = vpop.f32.mrb[13].mxu0 }
 0x933   :  { %v1114_v33 = vadd.f32 %v1155_v24, %v1113_v31 }
 0x934   :  { %1126 = vst.msk [vmem:[%s2687_s8 + $0x8] sm:$0xff] %vm1124_vm1, %v1119_v29 }
 0x935   :  { %1125 = vst.msk [vmem:[%s2687_s8] sm:$0xff] %vm1124_vm1, %v1114_v33 }
 0x936   :  { %1864 = dma.done.wait [#allocation4], 256  }
 0x937   :  { %1865 = vsyncadd [#allocation4], 4294967040 }
 0x938   :  { %1150 = vsyncpa [#allocation4], 1 }

</bundles_post_ra>
